<compile_context>
chip_gen: v6e
topology: v6e:2x2x1
jax: 0.10.0
libtpu: 0.0.40
codegen_flags: <defaults>
</compile_context>

<pallas_src>
import functools

import jax
import jax.numpy as jnp
import numpy as np
from jax import lax
from jax.experimental import pallas as pl
from jax.experimental.pallas import tpu as pltpu

_EPS = 1e-5


# ----------------------------- Pallas kernel --------------------------------

def _bottleneck_kernel(*refs, pp, c4, w, has_sel, has_shortcut_conv):
    """Whole bottleneck block, channels-first (C, N*H*W) layout, one shot."""
    it = iter(refs)
    x_ref = next(it)        # (Cin, L)        f32
    mask_ref = next(it)     # (9, L)          f32  per-tap zero-padding masks
    w1_ref = next(it)       # (Pp, Cin)       bf16 (BN1 scale folded)
    w2_ref = next(it)       # (Pp, 9*Pp)      bf16 (BN2 scale folded, im2col)
    w3_ref = next(it)       # (C4, Pp)        bf16 (BN3 scale folded)
    b_ref = next(it)        # (2*Pp+C4[+C4],1) f32  packed b1|b2|b3[|bs]
    sel_ref = next(it) if has_sel else None            # (L, Lo) bf16 0/1
    xsc_ref = next(it) if has_sel else None            # (Cin, Lo) f32 pre-strided
    ws_ref = next(it) if has_shortcut_conv else None   # (C4, Cin) bf16
    o_ref = next(it)        # (C4, Lo)        f32

    L = x_ref.shape[1]
    x = x_ref[...]
    xb = x.astype(jnp.bfloat16)

    # --- conv1 (1x1) + bn1 + relu --------------------------------------------
    t1 = jnp.dot(w1_ref[...], xb, preferred_element_type=jnp.float32)
    t1 = jnp.maximum(t1 + b_ref[0:pp, :], 0.0)                    # (Pp, L) f32

    # --- conv2 (3x3, pad=1) as one im2col matmul ------------------------------
    # Each tap = lane-roll of the flattened spatial axis (XLU) times a
    # precomputed validity mask; taps stay in registers and are concatenated
    # on 8-sublane-aligned boundaries (Pp is a multiple of 8).
    taps = []
    for dy in range(3):
        for dx in range(3):
            tap = dy * 3 + dx
            d = (dy - 1) * w + (dx - 1)                           # flat offset
            if d == 0:                                            # center tap
                taps.append(t1)                                   # mask == 1
            else:
                shifted = pltpu.roll(t1, shift=(-d) % L, axis=1)
                taps.append(shifted * mask_ref[tap:tap + 1, :])
    patch = jnp.concatenate(taps, axis=0).astype(jnp.bfloat16)    # (9*Pp, L)
    t2 = jnp.dot(w2_ref[...], patch,
                 preferred_element_type=jnp.float32)              # (Pp, L) f32

    # --- stride: select conv2 output columns (tiny P-row matmul) --------------
    if has_sel:
        t2 = jnp.dot(t2.astype(jnp.bfloat16), sel_ref[...],
                     preferred_element_type=jnp.float32)          # (Pp, Lo)
        x_sc = xsc_ref[...]                                       # pre-strided
        x_sc_b = x_sc.astype(jnp.bfloat16)
    else:
        x_sc = x
        x_sc_b = xb
    t2 = jnp.maximum(t2 + b_ref[pp:2 * pp, :], 0.0)

    # --- conv3 (1x1) + bn3 + shortcut + relu ----------------------------------
    y = jnp.dot(w3_ref[...], t2.astype(jnp.bfloat16),
                preferred_element_type=jnp.float32) + b_ref[2 * pp:2 * pp + c4, :]
    if has_shortcut_conv:
        sc = (jnp.dot(ws_ref[...], x_sc_b, preferred_element_type=jnp.float32)
              + b_ref[2 * pp + c4:2 * pp + 2 * c4, :])
    else:
        sc = x_sc            # identity shortcut (stride == 1, Cin == 4P)
    o_ref[...] = jnp.maximum(y + sc, 0.0)


# ------------------------------ JAX wrapper ----------------------------------

def bottleneck_xxs_forward(x_nchw, params, *, stride=1):
    """Forward pass of Bottleneck_xxs. Input/output are NCHW (PyTorch layout)."""
    N, Cin, H, W = x_nchw.shape
    P = params["w1"].shape[0]
    C4 = params["w3"].shape[0]
    Pp = ((P + 7) // 8) * 8                       # pad planes to 8-sublane mult
    HW = H * W
    Ho = (H - 1) // stride + 1
    Wo = (W - 1) // stride + 1
    HWo = Ho * Wo
    has_sc = "ws" in params
    has_sel = stride > 1
    if not has_sc:
        assert stride == 1 and Cin == C4, (
            "identity shortcut requires stride == 1 and in_planes == 4*planes")

    # Collapse the whole (small) batch into the lane axis: (C, N*HW) layout.
    nb = N
    G = N // nb
    L = nb * HW
    Lo = nb * HWo
    bf16 = jnp.bfloat16

    def pad_rows(a, rows):
        return jnp.pad(a, ((0, rows - a.shape[0]),) + ((0, 0),) * (a.ndim - 1))

    # Fold eval-mode BN scales into conv weights, pad planes to Pp, cast bf16.
    w1t = pad_rows(params["w1"] * params["s1"][:, None], Pp).astype(bf16)  # (Pp,Cin)
    w2f = params["w2"] * params["s2"][:, None, None, None]                 # (P,P,3,3)
    w2r = jnp.transpose(w2f, (0, 2, 3, 1))                                 # (P,3,3,P)
    w2r = jnp.pad(w2r, ((0, Pp - P), (0, 0), (0, 0), (0, Pp - P)))
    w2row = w2r.reshape(Pp, 9 * Pp).astype(bf16)                           # (Pp,9Pp)
    w3t = jnp.pad(params["w3"] * params["s3"][:, None],
                  ((0, 0), (0, Pp - P))).astype(bf16)                      # (C4,Pp)

    # Packed per-channel biases: b1 | b2 | b3 [| bs]  (single tiny operand).
    bias_parts = [pad_rows(params["b1"].reshape(P, 1), Pp),
                  pad_rows(params["b2"].reshape(P, 1), Pp),
                  params["b3"].reshape(C4, 1)]
    if has_sc:
        bias_parts.append(params["bs"].reshape(C4, 1))
    bias = jnp.concatenate(bias_parts, axis=0).astype(jnp.float32)

    # Per-tap zero-padding validity masks, tiled across the nb batch elements.
    yy, xx = np.meshgrid(np.arange(H), np.arange(W), indexing="ij")
    mask_np = np.zeros((9, HW), np.float32)
    for dy in range(3):
        for dx in range(3):
            valid = ((yy + dy - 1 >= 0) & (yy + dy - 1 < H) &
                     (xx + dx - 1 >= 0) & (xx + dx - 1 < W))
            mask_np[dy * 3 + dx] = valid.reshape(-1).astype(np.float32)
    masks = jnp.asarray(np.tile(mask_np, (1, nb)))                         # (9, L)

    # Channels-first with batch folded into lanes: (G, Cin, nb*HW).
    x3 = jnp.transpose(x_nchw.reshape(G, nb, Cin, HW),
                       (0, 2, 1, 3)).reshape(G, Cin, L)

    inputs = [x3, masks, w1t, w2row, w3t, bias]
    in_specs = [
        pl.BlockSpec((None, Cin, L), lambda n: (n, 0, 0)),
        pl.BlockSpec(masks.shape, lambda n: (0, 0)),
        pl.BlockSpec(w1t.shape, lambda n: (0, 0)),
        pl.BlockSpec(w2row.shape, lambda n: (0, 0)),
        pl.BlockSpec(w3t.shape, lambda n: (0, 0)),
        pl.BlockSpec(bias.shape, lambda n: (0, 0)),
    ]
    if has_sel:
        # 0/1 column-selection for the conv2 output stride (tiny: M = Pp rows).
        sel_np = np.zeros((L, Lo), np.float32)
        for b in range(nb):
            for oy in range(Ho):
                for ox in range(Wo):
                    sel_np[b * HW + oy * stride * W + ox * stride,
                           b * HWo + oy * Wo + ox] = 1.0
        inputs.append(jnp.asarray(sel_np).astype(bf16))
        in_specs.append(pl.BlockSpec((L, Lo), lambda n: (0, 0)))
        # Pre-strided shortcut input: replaces the big dot(x, sel) matmul.
        xsc = x_nchw[:, :, ::stride, ::stride].reshape(G, nb, Cin, HWo)
        xsc = jnp.transpose(xsc, (0, 2, 1, 3)).reshape(G, Cin, Lo)
        inputs.append(xsc)
        in_specs.append(pl.BlockSpec((None, Cin, Lo), lambda n: (n, 0, 0)))
    if has_sc:
        wst = (params["ws"] * params["ss"][:, None]).astype(bf16)          # (C4,Cin)
        inputs.append(wst)
        in_specs.append(pl.BlockSpec(wst.shape, lambda n: (0, 0)))

    kernel = functools.partial(_bottleneck_kernel, pp=Pp, c4=C4, w=W,
                               has_sel=has_sel, has_shortcut_conv=has_sc)

    out = pl.pallas_call(
        kernel,
        out_shape=jax.ShapeDtypeStruct((G, C4, Lo), jnp.float32),
        grid=(G,),
        in_specs=in_specs,
        out_specs=pl.BlockSpec((None, C4, Lo), lambda n: (n, 0, 0)),
        compiler_params=pltpu.CompilerParams(
            dimension_semantics=("parallel",)),
    )(*inputs)
    # (G, C4, nb*HWo) -> NCHW
    out = out.reshape(G, C4, nb, HWo).transpose(0, 2, 1, 3)
    return out.reshape(N, C4, Ho, Wo)


# -------------------------- parameters & reference ---------------------------

def _fold_bn(gamma, beta, mean, var):
    scale = gamma / jnp.sqrt(var + _EPS)
    bias = beta - mean * scale
    return scale, bias


def make_params(key, in_planes, planes, stride):
    expansion = 4
    ks = jax.random.split(key, 20)

    def bn(k0, k1, k2, k3, c):
        gamma = 1.0 + 0.1 * jax.random.normal(k0, (c,), jnp.float32)
        beta = 0.1 * jax.random.normal(k1, (c,), jnp.float32)
        mean = 0.1 * jax.random.normal(k2, (c,), jnp.float32)
        var = jax.random.uniform(k3, (c,), jnp.float32, 0.5, 1.5)
        return _fold_bn(gamma, beta, mean, var)

    p = {}
    # PyTorch conv weight layouts: conv1 (P,Cin), conv2 OIHW, conv3 (4P,P).
    p["w1"] = 0.1 * jax.random.normal(ks[0], (planes, in_planes), jnp.float32)
    p["s1"], p["b1"] = bn(ks[1], ks[2], ks[3], ks[4], planes)
    p["w2"] = 0.1 * jax.random.normal(ks[5], (planes, planes, 3, 3), jnp.float32)
    p["s2"], p["b2"] = bn(ks[6], ks[7], ks[8], ks[9], planes)
    p["w3"] = 0.1 * jax.random.normal(
        ks[10], (expansion * planes, planes), jnp.float32)
    p["s3"], p["b3"] = bn(ks[11], ks[12], ks[13], ks[14], expansion * planes)
    if stride != 1 or in_planes != expansion * planes:
        p["ws"] = 0.1 * jax.random.normal(
            ks[15], (expansion * planes, in_planes), jnp.float32)
        p["ss"], p["bs"] = bn(ks[16], ks[17], ks[18], ks[19], expansion * planes)
    return p


def bottleneck_xxs_reference(x_nchw, p, *, stride=1):
    """Pure-JAX reference (no Pallas) in NCHW for correctness checking."""
    hp = lax.Precision.HIGHEST

    def bn(y, s, b):
        return y * s[None, :, None, None] + b[None, :, None, None]

    out = jax.nn.relu(bn(jnp.einsum("nchw,oc->nohw", x_nchw, p["w1"],
                                    precision=hp), p["s1"], p["b1"]))
    out = lax.conv_general_dilated(
        out, p["w2"], (stride, stride), ((1, 1), (1, 1)),
        dimension_numbers=("NCHW", "OIHW", "NCHW"), precision=hp)
    out = jax.nn.relu(bn(out, p["s2"], p["b2"]))
    out = bn(jnp.einsum("nchw,oc->nohw", out, p["w3"], precision=hp),
             p["s3"], p["b3"])
    if "ws" in p:
        xs = x_nchw[:, :, ::stride, ::stride]
        sc = bn(jnp.einsum("nchw,oc->nohw", xs, p["ws"], precision=hp),
                p["ss"], p["bs"])
    else:
        sc = x_nchw
    return jax.nn.relu(out + sc)


# ---------------------------------- main --------------------------------------

if __name__ == "__main__":
    key = jax.random.PRNGKey(0)
    N, H, W = 2, 16, 16

    configs = [
        (4, 4, 1),    # conv shortcut (channel mismatch), stride 1
        (4, 4, 2),    # conv shortcut, stride 2
        (16, 4, 1),   # identity shortcut (in_planes == 4*planes, stride 1)
    ]
    for in_planes, planes, stride in configs:
        kx, kp, key = jax.random.split(key, 3)
        x = jax.random.normal(kx, (N, in_planes, H, W), jnp.float32)  # NCHW
        params = make_params(kp, in_planes, planes, stride)

        out = jax.block_until_ready(
            bottleneck_xxs_forward(x, params, stride=stride))
        ref = jax.block_until_ready(
            bottleneck_xxs_reference(x, params, stride=stride))

        assert out.shape == ref.shape, (out.shape, ref.shape)
        # Kernel uses bf16 MXU operands (f32 accumulation); reference is f32
        # HIGHEST precision -> bf16-appropriate tolerances.
        np.testing.assert_allclose(np.asarray(out), np.asarray(ref),
                                   rtol=2e-2, atol=2e-2)

    print("KERNEL_OK")
</pallas_src>

<mosaic_0001>
module attributes {stable_mosaic.version = 11 : i64} {
  func.func @_bottleneck_kernel(%arg0: i32, %arg1: memref<1x4x512xf32, #tpu.memory_space<vmem>>, %arg2: memref<9x512xf32, #tpu.memory_space<vmem>>, %arg3: memref<8x4xbf16, #tpu.memory_space<vmem>>, %arg4: memref<8x72xbf16, #tpu.memory_space<vmem>>, %arg5: memref<16x8xbf16, #tpu.memory_space<vmem>>, %arg6: memref<48x1xf32, #tpu.memory_space<vmem>>, %arg7: memref<16x4xbf16, #tpu.memory_space<vmem>>, %arg8: memref<1x16x512xf32, #tpu.memory_space<vmem>>) attributes {dimension_semantics = [#tpu.dimension_semantics<parallel>], iteration_bounds = array<i64: 1>, scalar_prefetch = 0 : i64, scratch_operands = 0 : i64, tpu.core_type = #tpu.core_type<tc>, window_params = [{transform_indices = @transform_0, window_bounds = array<i64: 1, 4, 512>}, {pipeline_mode = #tpu.pipeline_mode<synchronous>, transform_indices = @transform_1, window_bounds = array<i64: 9, 512>}, {pipeline_mode = #tpu.pipeline_mode<synchronous>, transform_indices = @transform_2, window_bounds = array<i64: 8, 4>}, {pipeline_mode = #tpu.pipeline_mode<synchronous>, transform_indices = @transform_3, window_bounds = array<i64: 8, 72>}, {pipeline_mode = #tpu.pipeline_mode<synchronous>, transform_indices = @transform_4, window_bounds = array<i64: 16, 8>}, {pipeline_mode = #tpu.pipeline_mode<synchronous>, transform_indices = @transform_5, window_bounds = array<i64: 48, 1>}, {pipeline_mode = #tpu.pipeline_mode<synchronous>, transform_indices = @transform_6, window_bounds = array<i64: 16, 4>}, {transform_indices = @transform_7, window_bounds = array<i64: 1, 16, 512>}]} {
    %c0 = arith.constant 0 : index
    %c0_0 = arith.constant 0 : index
    %c0_1 = arith.constant 0 : index
    %0 = vector.load %arg1[%c0, %c0_0, %c0_1] : memref<1x4x512xf32, #tpu.memory_space<vmem>>, vector<1x4x512xf32>
    %1 = vector.shape_cast %0 : vector<1x4x512xf32> to vector<4x512xf32>
    %2 = arith.truncf %1 : vector<4x512xf32> to vector<4x512xbf16>
    %c0_2 = arith.constant 0 : index
    %c0_3 = arith.constant 0 : index
    %3 = vector.load %arg3[%c0_2, %c0_3] : memref<8x4xbf16, #tpu.memory_space<vmem>>, vector<8x4xbf16>
    %cst = arith.constant dense<0.000000e+00> : vector<8x512xf32>
    %4 = tpu.matmul %3, %2, %cst {dimension_numbers = #tpu.dot_dimension_numbers<[1], [0], [0], [1], [0, 0, 1, 1], [], []>} : vector<8x4xbf16>, vector<4x512xbf16>, vector<8x512xf32> -> vector<8x512xf32>
    %c0_4 = arith.constant 0 : index
    %c0_5 = arith.constant 0 : index
    %5 = vector.load %arg6[%c0_4, %c0_5] : memref<48x1xf32, #tpu.memory_space<vmem>>, vector<8x1xf32>
    %6 = vector.broadcast %5 : vector<8x1xf32> to vector<8x512xf32>
    %7 = arith.addf %4, %6 : vector<8x512xf32>
    %cst_6 = arith.constant 0.000000e+00 : f32
    %8 = vector.broadcast %cst_6 : f32 to vector<8x512xf32>
    %9 = arith.maximumf %7, %8 : vector<8x512xf32>
    %c17_i32 = arith.constant 17 : i32
    %10 = tpu.dynamic_rotate %9 by %c17_i32 dim 1 : vector<8x512xf32>, i32 -> vector<8x512xf32>
    %c0_7 = arith.constant 0 : index
    %c0_8 = arith.constant 0 : index
    %11 = vector.load %arg2[%c0_7, %c0_8] : memref<9x512xf32, #tpu.memory_space<vmem>>, vector<1x512xf32>
    %12 = vector.broadcast %11 : vector<1x512xf32> to vector<8x512xf32>
    %13 = arith.mulf %10, %12 : vector<8x512xf32>
    %c16_i32 = arith.constant 16 : i32
    %14 = tpu.dynamic_rotate %9 by %c16_i32 dim 1 : vector<8x512xf32>, i32 -> vector<8x512xf32>
    %c1 = arith.constant 1 : index
    %c0_9 = arith.constant 0 : index
    %15 = vector.load %arg2[%c1, %c0_9] : memref<9x512xf32, #tpu.memory_space<vmem>>, vector<1x512xf32>
    %16 = vector.broadcast %15 : vector<1x512xf32> to vector<8x512xf32>
    %17 = arith.mulf %14, %16 : vector<8x512xf32>
    %c15_i32 = arith.constant 15 : i32
    %18 = tpu.dynamic_rotate %9 by %c15_i32 dim 1 : vector<8x512xf32>, i32 -> vector<8x512xf32>
    %c2 = arith.constant 2 : index
    %c0_10 = arith.constant 0 : index
    %19 = vector.load %arg2[%c2, %c0_10] : memref<9x512xf32, #tpu.memory_space<vmem>>, vector<1x512xf32>
    %20 = vector.broadcast %19 : vector<1x512xf32> to vector<8x512xf32>
    %21 = arith.mulf %18, %20 : vector<8x512xf32>
    %c1_i32 = arith.constant 1 : i32
    %22 = tpu.dynamic_rotate %9 by %c1_i32 dim 1 : vector<8x512xf32>, i32 -> vector<8x512xf32>
    %c3 = arith.constant 3 : index
    %c0_11 = arith.constant 0 : index
    %23 = vector.load %arg2[%c3, %c0_11] : memref<9x512xf32, #tpu.memory_space<vmem>>, vector<1x512xf32>
    %24 = vector.broadcast %23 : vector<1x512xf32> to vector<8x512xf32>
    %25 = arith.mulf %22, %24 : vector<8x512xf32>
    %c511_i32 = arith.constant 511 : i32
    %26 = tpu.dynamic_rotate %9 by %c511_i32 dim 1 : vector<8x512xf32>, i32 -> vector<8x512xf32>
    %c5 = arith.constant 5 : index
    %c0_12 = arith.constant 0 : index
    %27 = vector.load %arg2[%c5, %c0_12] : memref<9x512xf32, #tpu.memory_space<vmem>>, vector<1x512xf32>
    %28 = vector.broadcast %27 : vector<1x512xf32> to vector<8x512xf32>
    %29 = arith.mulf %26, %28 : vector<8x512xf32>
    %c497_i32 = arith.constant 497 : i32
    %30 = tpu.dynamic_rotate %9 by %c497_i32 dim 1 : vector<8x512xf32>, i32 -> vector<8x512xf32>
    %c6 = arith.constant 6 : index
    %c0_13 = arith.constant 0 : index
    %31 = vector.load %arg2[%c6, %c0_13] : memref<9x512xf32, #tpu.memory_space<vmem>>, vector<1x512xf32>
    %32 = vector.broadcast %31 : vector<1x512xf32> to vector<8x512xf32>
    %33 = arith.mulf %30, %32 : vector<8x512xf32>
    %c496_i32 = arith.constant 496 : i32
    %34 = tpu.dynamic_rotate %9 by %c496_i32 dim 1 : vector<8x512xf32>, i32 -> vector<8x512xf32>
    %c7 = arith.constant 7 : index
    %c0_14 = arith.constant 0 : index
    %35 = vector.load %arg2[%c7, %c0_14] : memref<9x512xf32, #tpu.memory_space<vmem>>, vector<1x512xf32>
    %36 = vector.broadcast %35 : vector<1x512xf32> to vector<8x512xf32>
    %37 = arith.mulf %34, %36 : vector<8x512xf32>
    %c495_i32 = arith.constant 495 : i32
    %38 = tpu.dynamic_rotate %9 by %c495_i32 dim 1 : vector<8x512xf32>, i32 -> vector<8x512xf32>
    %c8 = arith.constant 8 : index
    %c0_15 = arith.constant 0 : index
    %39 = vector.load %arg2[%c8, %c0_15] : memref<9x512xf32, #tpu.memory_space<vmem>>, vector<1x512xf32>
    %40 = vector.broadcast %39 : vector<1x512xf32> to vector<8x512xf32>
    %41 = arith.mulf %38, %40 : vector<8x512xf32>
    %42 = tpu.concatenate %13, %17, %21, %25, %9, %29, %33, %37, %41 in 0 : vector<8x512xf32>, vector<8x512xf32>, vector<8x512xf32>, vector<8x512xf32>, vector<8x512xf32>, vector<8x512xf32>, vector<8x512xf32>, vector<8x512xf32>, vector<8x512xf32> -> vector<72x512xf32>
    %43 = arith.truncf %42 : vector<72x512xf32> to vector<72x512xbf16>
    %c0_16 = arith.constant 0 : index
    %c0_17 = arith.constant 0 : index
    %44 = vector.load %arg4[%c0_16, %c0_17] : memref<8x72xbf16, #tpu.memory_space<vmem>>, vector<8x72xbf16>
    %cst_18 = arith.constant dense<0.000000e+00> : vector<8x512xf32>
    %45 = tpu.matmul %44, %43, %cst_18 {dimension_numbers = #tpu.dot_dimension_numbers<[1], [0], [0], [1], [0, 0, 1, 1], [], []>} : vector<8x72xbf16>, vector<72x512xbf16>, vector<8x512xf32> -> vector<8x512xf32>
    %c8_19 = arith.constant 8 : index
    %c0_20 = arith.constant 0 : index
    %46 = vector.load %arg6[%c8_19, %c0_20] : memref<48x1xf32, #tpu.memory_space<vmem>>, vector<8x1xf32>
    %47 = vector.broadcast %46 : vector<8x1xf32> to vector<8x512xf32>
    %48 = arith.addf %45, %47 : vector<8x512xf32>
    %cst_21 = arith.constant 0.000000e+00 : f32
    %49 = vector.broadcast %cst_21 : f32 to vector<8x512xf32>
    %50 = arith.maximumf %48, %49 : vector<8x512xf32>
    %c0_22 = arith.constant 0 : index
    %c0_23 = arith.constant 0 : index
    %51 = vector.load %arg5[%c0_22, %c0_23] : memref<16x8xbf16, #tpu.memory_space<vmem>>, vector<16x8xbf16>
    %52 = arith.truncf %50 : vector<8x512xf32> to vector<8x512xbf16>
    %cst_24 = arith.constant dense<0.000000e+00> : vector<16x512xf32>
    %53 = tpu.matmul %51, %52, %cst_24 {dimension_numbers = #tpu.dot_dimension_numbers<[1], [0], [0], [1], [0, 0, 1, 1], [], []>} : vector<16x8xbf16>, vector<8x512xbf16>, vector<16x512xf32> -> vector<16x512xf32>
    %c16 = arith.constant 16 : index
    %c0_25 = arith.constant 0 : index
    %54 = vector.load %arg6[%c16, %c0_25] : memref<48x1xf32, #tpu.memory_space<vmem>>, vector<16x1xf32>
    %55 = vector.broadcast %54 : vector<16x1xf32> to vector<16x512xf32>
    %56 = arith.addf %53, %55 : vector<16x512xf32>
    %c0_26 = arith.constant 0 : index
    %c0_27 = arith.constant 0 : index
    %57 = vector.load %arg7[%c0_26, %c0_27] : memref<16x4xbf16, #tpu.memory_space<vmem>>, vector<16x4xbf16>
    %cst_28 = arith.constant dense<0.000000e+00> : vector<16x512xf32>
    %58 = tpu.matmul %57, %2, %cst_28 {dimension_numbers = #tpu.dot_dimension_numbers<[1], [0], [0], [1], [0, 0, 1, 1], [], []>} : vector<16x4xbf16>, vector<4x512xbf16>, vector<16x512xf32> -> vector<16x512xf32>
    %c32 = arith.constant 32 : index
    %c0_29 = arith.constant 0 : index
    %59 = vector.load %arg6[%c32, %c0_29] : memref<48x1xf32, #tpu.memory_space<vmem>>, vector<16x1xf32>
    %60 = vector.broadcast %59 : vector<16x1xf32> to vector<16x512xf32>
    %61 = arith.addf %58, %60 : vector<16x512xf32>
    %62 = arith.addf %56, %61 : vector<16x512xf32>
    %cst_30 = arith.constant 0.000000e+00 : f32
    %63 = vector.broadcast %cst_30 : f32 to vector<16x512xf32>
    %64 = arith.maximumf %62, %63 : vector<16x512xf32>
    %c0_31 = arith.constant 0 : index
    %c0_32 = arith.constant 0 : index
    %c0_33 = arith.constant 0 : index
    %65 = vector.load %arg8[%c0_31, %c0_32, %c0_33] : memref<1x16x512xf32, #tpu.memory_space<vmem>>, vector<1x16x512xf32>
    %66 = vector.shape_cast %65 : vector<1x16x512xf32> to vector<16x512xf32>
    %67 = vector.shape_cast %64 : vector<16x512xf32> to vector<1x16x512xf32>
    tpu.vector_store %arg8[%c0_31, %c0_32, %c0_33], %67 {strides = array<i32>} : memref<1x16x512xf32, #tpu.memory_space<vmem>>, vector<1x16x512xf32>,
    return
  }
  func.func @transform_0(%arg0: i32) -> (i32, i32, i32) {
    %c0_i32 = arith.constant 0 : i32
    %c0_i32_0 = arith.constant 0 : i32
    %c0_i32_1 = arith.constant 0 : i32
    return %arg0, %c0_i32, %c0_i32_0 : i32, i32, i32
  }
  func.func @transform_1(%arg0: i32) -> (i32, i32) {
    %c0_i32 = arith.constant 0 : i32
    %c0_i32_0 = arith.constant 0 : i32
    %c0_i32_1 = arith.constant 0 : i32
    return %c0_i32, %c0_i32_0 : i32, i32
  }
  func.func @transform_2(%arg0: i32) -> (i32, i32) {
    %c0_i32 = arith.constant 0 : i32
    %c0_i32_0 = arith.constant 0 : i32
    %c0_i32_1 = arith.constant 0 : i32
    return %c0_i32, %c0_i32_0 : i32, i32
  }
  func.func @transform_3(%arg0: i32) -> (i32, i32) {
    %c0_i32 = arith.constant 0 : i32
    %c0_i32_0 = arith.constant 0 : i32
    %c0_i32_1 = arith.constant 0 : i32
    return %c0_i32, %c0_i32_0 : i32, i32
  }
  func.func @transform_4(%arg0: i32) -> (i32, i32) {
    %c0_i32 = arith.constant 0 : i32
    %c0_i32_0 = arith.constant 0 : i32
    %c0_i32_1 = arith.constant 0 : i32
    return %c0_i32, %c0_i32_0 : i32, i32
  }
  func.func @transform_5(%arg0: i32) -> (i32, i32) {
    %c0_i32 = arith.constant 0 : i32
    %c0_i32_0 = arith.constant 0 : i32
    %c0_i32_1 = arith.constant 0 : i32
    return %c0_i32, %c0_i32_0 : i32, i32
  }
  func.func @transform_6(%arg0: i32) -> (i32, i32) {
    %c0_i32 = arith.constant 0 : i32
    %c0_i32_0 = arith.constant 0 : i32
    %c0_i32_1 = arith.constant 0 : i32
    return %c0_i32, %c0_i32_0 : i32, i32
  }
  func.func @transform_7(%arg0: i32) -> (i32, i32, i32) {
    %c0_i32 = arith.constant 0 : i32
    %c0_i32_0 = arith.constant 0 : i32
    %c0_i32_1 = arith.constant 0 : i32
    return %arg0, %c0_i32, %c0_i32_0 : i32, i32, i32
  }
}

</mosaic_0001>

<bundles_post_ra>
// kernel: tpu_custom_call.1
= control target key start
LH: loop header
LB: loop body
LE: loop exit
PB: predicated region body
PF: predicated region fallthrough
CT: control target
= control target key end

     0   :  { %12 = vsyncpa [#allocation3], 0  ;;  %s1388_s0 = inlined_call_operand.hbm [shape: f32[1,4,512], index: 0, kind: input, shape index: {}]   ;;  %s1389_s1 = inlined_call_operand.vmem [shape: f32[9,512], index: 1, kind: input, shape index: {}]   ;;  %s1390_s2 = inlined_call_operand.vmem [shape: bf16[8,4], index: 2, kind: input, shape index: {}]   ;;  %s1391_s3 = inlined_call_operand.vmem [shape: bf16[8,72], index: 3, kind: input, shape index: {}]   ;;  %s1392_s4 = inlined_call_operand.vmem [shape: bf16[16,8], index: 4, kind: input, shape index: {}]   ;;  %s1393_s5 = inlined_call_operand.vmem [shape: f32[48,1], index: 5, kind: input, shape index: {}]   ;;  %s1394_s6 = inlined_call_operand.vmem [shape: bf16[16,4], index: 6, kind: input, shape index: {}]   ;;  %s1395_s7 = inlined_call_operand.hbm [shape: f32[1,16,512], index: 7, kind: output, shape index: {}]  }
   0x1   :  { %13 = vsyncpa [#allocation4], 0  ;;  %s975_s24 = smov [#allocation2]  }
   0x2   :  { %s20_s25 = sshll.u32 %s975_s24, 4  ;;  %s21_s25 = int_to_ptr.vmem [resolvable:$true] %s20_s25 }
   0x3   :  { %s939_s26 = scalar_lea.vmem %s21_s25, 256  ;;  %p944_p1 = scmp.lt.s32.totalorder %s21_s25, %s21_s25 }
   0x4   :  { %p940_p0 = scmp.ne.s32.totalorder %s21_s25, %s939_s26  ;;  %p945_p2 = scmp.lt.s32.totalorder %s939_s26, %s939_s26 }
   0x6   :  { %p946_p3 = por %p945_p2, %p944_p1 }
   0x8   :  { %p947_p4 = pnand %p946_p3, %p940_p0 }
   0xa   :  { %950 = shalt.err (!%p947_p4)
}
   0xb   :  { %23 = dma.hbm_to_vmem [thread:$0]  %s1388_s0, 256, %s21_s25, [#allocation3]  }
   0xc   :  { %971 = dma.done.wait [#allocation3], 256  }
   0xd   :  { %972 = vsyncadd [#allocation3], 4294967040  ;;  %v976_v0 = vmov 0   ;;  %v40_v1 = vld [vmem:[#allocation2] sm:$0xff]  ;;  %vm63_vm0 = vcmask 1041408   ;;  %v41_v2 = vld [vmem:[#allocation2 + $0x8] sm:$0xff]  ;;  %v170_v35 = vlaneseq }
   0xe   :  { %108 = vmatprep.mubr.bf16.mxu0 %v976_v0  ;;  %149 = vmatprep.mubr.bf16.mxu1 %v976_v0  ;;  %v44_v3 = vcombine.high %v40_v1, %v40_v1  ;;  %v45_v4 = vcombine.high %v41_v2, %v41_v2  ;;  %v48_v5 = vpack.c.bf16 %v40_v1, %v40_v1  ;;  %v53_v7 = vld [vmem:[%s1393_s5] sm:$0xff]  ;;  %vm59_vm1 = vcmask 31744   ;;  %s978_s9 = smov 113   ;;  %s979_s10 = smov 112   ;;  %v619_v30 = vld [vmem:[%s1393_s5 + $0x10] sm:$0xff]  ;;  %v504_v31 = vld [vmem:[%s1393_s5 + $0x8] sm:$0xff] }
   0xf   :  { %925 = vset.pattern.permute.xlu0 %v976_v0  ;;  %926 = vset.pattern.permute.xlu1 %v976_v0  ;;  %v50_v6 = vpack.c.bf16 %v41_v2, %v41_v2  ;;  %v52_v12 = vld [vmem:[%s1390_s2] sm:$0xf]  ;;  %s977_s2 = smov 111   ;;  %s980_s11 = smov 127   ;;  %v620_v33 = vld [vmem:[%s1393_s5 + $0x18] sm:$0xff]  ;;  %v741_v34 = vld [vmem:[%s1393_s5 + $0x28] sm:$0xff] }
  0x10   :  { %56 = vperm.xlu0 %925, %v53_v7   ;;  %v1038_v8 = vpack.c.bf16 %v44_v3, %v44_v3  ;;  %v1040_v9 = vpack.c.bf16 %v45_v4, %v45_v4  ;;  %v1043_v10 = vsel %vm63_vm0, %v48_v5, 0  ;;  %s981_s12 = smov 15   ;;  %s982_s13 = smov 1   ;;  %v740_v32 = vld [vmem:[%s1393_s5 + $0x20] sm:$0xff]  ;;  %v1120_v36 = vshrl.u32 %v170_v35, 7 }
  0x11   :  { %v1046_v11 = vsel %vm63_vm0, %v50_v6, 0  ;;  %s983_s14 = smov 17   ;;  %s984_s15 = smov 16   ;;  %v1122_v37 = vand.u32 127, %v170_v35  ;;  %vm514_vm3 = vcmask 1043456   ;;  %vm510_vm11 = vcmask 588800  }
  0x12   :  { %887 = vmatprep.subr.msk.bf16.mxu0 %vm63_vm0, %v1038_v8  ;;  %889 = vmatprep.subr.msk.bf16.mxu1 %vm63_vm0, %v1040_v9  ;;  %v1125_v38 = vsub.s32 2, %v1120_v36  ;;  %v1128_v39 = vsub.s32 3, %v1120_v36  ;;  %v1133_v40 = vld [vmem:[%s1389_s1 + $0x20] ss:$8 sm:$0xf]  ;;  %vm636_vm12 = vcmask 64512  }
  0x13   :  { %91 = vmatpush1.bf16.msra.mxu0 %v1043_v10  ;;  %132 = vmatpush1.bf16.msra.mxu1 %v1046_v11  ;;  %vm451_vm2 = vcmp.lt.s32.totalorder %v1122_v37, 111  ;;  %v1163_v58 = vld [vmem:[%s1389_s1 + $0x6] ss:$8 sm:$0xf]  ;;  %vm371_vm4 = vcmp.lt.s32.totalorder %v1122_v37, 113  ;;  %vm411_vm5 = vcmp.lt.s32.totalorder %v1122_v37, 112 }
  0x14   :  { %v470_v43 = vrot.slane %v1133_v40, %v1125_v38  ;;  %v474_v44 = vrot.slane %v1133_v40, %v1128_v39  ;;  %v1171_v61 = vld [vmem:[%s1389_s1 + $0x7] ss:$8 sm:$0xf]  ;;  %v390_v62 = vrot.slane %v1163_v58, %v1125_v38  ;;  %v394_v63 = vrot.slane %v1163_v58, %v1128_v39 }
  0x15   :  { %v430_v1 = vrot.slane %v1171_v61, %v1125_v38  ;;  %v434_v2 = vrot.slane %v1171_v61, %v1128_v39  ;;  %vm331_vm6 = vcmp.lt.s32.totalorder %v1122_v37, 127  ;;  %vm291_vm7 = vcmp.lt.s32.totalorder %v1122_v37, 1 }
  0x16   :  { %888 = vmatmul.mubr.msk.bf16.vlgmr.msra.gmra.mxu0 %vm59_vm1, %v52_v12  ;;  %890 = vmatmul.mubr.msk.bf16.vlgmr.msra.gmra.mxu1 %vm59_vm1, %v52_v12  ;;  %vm251_vm8 = vcmp.lt.s32.totalorder %v1122_v37, 15  ;;  %vm172_vm9 = vcmp.lt.s32.totalorder %v1122_v37, 17  ;;  %vm211_vm10 = vcmp.lt.s32.totalorder %v1122_v37, 16 }
  0x17   :  { %559 = vmatprep.mubr.bf16.mxu0 %v976_v0  ;;  %600 = vmatprep.mubr.bf16.mxu1 %v976_v0 }
  0x8b   :  { %v57_v13 = vpop.permute.xlu0 %56 }
  0xd6   :  { %v110_v14 = vpop.f32.mrf.mxu0  ;;  %v151_v15 = vpop.f32.mrf.mxu1 }
  0xd7   :  { %v111_v16 = vadd.f32 %v110_v14, %v57_v13  ;;  %v152_v17 = vadd.f32 %v151_v15, %v57_v13 }
  0xd8   :  { %v112_v18 = vpop.f32.mrf.mxu0  ;;  %v153_v19 = vpop.f32.mrf.mxu1 }
  0xd9   :  { %v1061_v20 = vmax.f32 %v111_v16, 0.0  ;;  %v1063_v21 = vmax.f32 %v152_v17, 0.0  ;;  %v154_v22 = vadd.f32 %v153_v19, %v57_v13  ;;  %v113_v27 = vadd.f32 %v112_v18, %v57_v13 }
  0xda   :  { %v114_v23 = vpop.f32.mrf.mxu0  ;;  %v155_v24 = vpop.f32.mrf.mxu1 }
  0xdb   :  { %447 = vrot.lane.b32.xlu1 %v1063_v21, %s977_s2  ;;  %443 = vrot.lane.b32.xlu0 %v1061_v20, %s977_s2  ;;  %v1069_v28 = vmax.f32 %v154_v22, 0.0  ;;  %v1074_v29 = vmax.f32 %v113_v27, 0.0  ;;  %v1200_v23 = vld [vmem:[%s1389_s1 + $0x5] ss:$8 sm:$0xf] }
  0xdc   :  { %v115_v25 = vpop.f32.mrf.mxu0  ;;  %v156_v26 = vpop.f32.mrf.mxu1  ;;  %v350_v24 = vrot.slane %v1200_v23, %v1125_v38 }
  0xdd   :  { %v354_v25 = vrot.slane %v1200_v23, %v1128_v39 }
  0xdf   :  { %363 = vrot.lane.b32.xlu1 %v1061_v20, %s978_s9  ;;  %449 = vrot.lane.b32.xlu0 %v1069_v28, %s977_s2 }
  0xe3   :  { %367 = vrot.lane.b32.xlu1 %v1063_v21, %s978_s9  ;;  %365 = vrot.lane.b32.xlu0 %v1074_v29, %s978_s9 }
  0xe7   :  { %403 = vrot.lane.b32.xlu1 %v1061_v20, %s979_s10  ;;  %369 = vrot.lane.b32.xlu0 %v1069_v28, %s978_s9 }
  0xeb   :  { %407 = vrot.lane.b32.xlu1 %v1063_v21, %s979_s10  ;;  %405 = vrot.lane.b32.xlu0 %v1074_v29, %s979_s10 }
  0xef   :  { %323 = vrot.lane.b32.xlu1 %v1061_v20, %s980_s11  ;;  %409 = vrot.lane.b32.xlu0 %v1069_v28, %s979_s10 }
  0xf3   :  { %327 = vrot.lane.b32.xlu1 %v1063_v21, %s980_s11  ;;  %325 = vrot.lane.b32.xlu0 %v1074_v29, %s980_s11 }
  0xf7   :  { %243 = vrot.lane.b32.xlu1 %v1061_v20, %s981_s12  ;;  %329 = vrot.lane.b32.xlu0 %v1069_v28, %s980_s11 }
  0xfb   :  { %247 = vrot.lane.b32.xlu1 %v1063_v21, %s981_s12  ;;  %245 = vrot.lane.b32.xlu0 %v1074_v29, %s981_s12 }
  0xff   :  { %283 = vrot.lane.b32.xlu1 %v1061_v20, %s982_s13  ;;  %249 = vrot.lane.b32.xlu0 %v1069_v28, %s981_s12 }
 0x103   :  { %287 = vrot.lane.b32.xlu1 %v1063_v21, %s982_s13  ;;  %285 = vrot.lane.b32.xlu0 %v1074_v29, %s982_s13 }
 0x107   :  { %445 = vrot.lane.b32.xlu1 %v1074_v29, %s977_s2  ;;  %289 = vrot.lane.b32.xlu0 %v1069_v28, %s982_s13 }
 0x10b   :  { %162 = vrot.lane.b32.xlu1 %v1061_v20, %s983_s14  ;;  %164 = vrot.lane.b32.xlu0 %v1074_v29, %s983_s14 }
 0x10f   :  { %166 = vrot.lane.b32.xlu1 %v1063_v21, %s983_s14  ;;  %168 = vrot.lane.b32.xlu0 %v1069_v28, %s983_s14 }
 0x113   :  { %203 = vrot.lane.b32.xlu1 %v1061_v20, %s984_s15  ;;  %205 = vrot.lane.b32.xlu0 %v1074_v29, %s984_s15 }
 0x117   :  { %207 = vrot.lane.b32.xlu1 %v1063_v21, %s984_s15  ;;  %209 = vrot.lane.b32.xlu0 %v1069_v28, %s984_s15 }
 0x11b   :  { %623 = vperm.xlu0 %925, %v619_v30   ;;  %507 = vperm.xlu1 %926, %v504_v31  }
 0x11f   :  { %744 = vperm.xlu0 %925, %v740_v32   ;;  %628 = vperm.xlu1 %926, %v620_v33  }
 0x123   :  { %749 = vperm.xlu1 %926, %v741_v34  }
 0x14d   :  { %v1135_v41 = vpop.permute.xlu1 %447  ;;  %v1137_v42 = vpop.permute.xlu0 %443 }
 0x151   :  { %v1144_v45 = vpop.permute.xlu1 %363  ;;  %v450_v46 = vpop.permute.xlu0 %449 }
 0x152   :  { %v452_v47 = vsel %vm451_vm2, %v1135_v41, %v450_v46  ;;  %v455_v48 = vsel %vm451_vm2, %v450_v46, %v1137_v42  ;;  %v1219_v46 = vsub.s32 0, %v1120_v36 }
 0x153   :  { %v481_v49 = vmul.f32 %v470_v43, %v452_v47  ;;  %v482_v50 = vmul.f32 %v474_v44, %v455_v48  ;;  %v1222_v47 = vsub.s32 1, %v1120_v36 }
 0x154   :  { %v422_v36 = vrot.slane %v1171_v61, %v1219_v46 }
 0x155   :  { %v501_v51 = vpack.c.bf16 %v481_v49, %v481_v49  ;;  %v502_v52 = vpack.c.bf16 %v482_v50, %v482_v50  ;;  %v1152_v53 = vpop.permute.xlu1 %367  ;;  %v1154_v54 = vpop.permute.xlu0 %365  ;;  %v386_v50 = vrot.slane %v1163_v58, %v1222_v47 }
 0x157   :  { %900 = vmatprep.subr.msk.bf16.mxu1 %vm514_vm3, %v502_v52  ;;  %v522_v55 = vsel %vm514_vm3, %v501_v51, 0  ;;  %v426_v51 = vrot.slane %v1171_v61, %v1222_v47  ;;  %v1245_v52 = vld [vmem:[%s1389_s1 + $0x2] ss:$8 sm:$0xf] }
 0x158   :  { %575 = vmatpush1.bf16.msra.mxu1 %v522_v55 }
 0x159   :  { %v1158_v56 = vpop.permute.xlu1 %403  ;;  %v370_v57 = vpop.permute.xlu0 %369 }
 0x15a   :  { %v372_v3 = vsel %vm371_vm4, %v1152_v53, %v370_v57  ;;  %v375_v4 = vsel %vm371_vm4, %v370_v57, %v1144_v45 }
 0x15b   :  { %v401_v13 = vmul.f32 %v390_v62, %v372_v3  ;;  %v402_v14 = vmul.f32 %v394_v63, %v375_v4  ;;  %v342_v3 = vrot.slane %v1200_v23, %v1219_v46  ;;  %v346_v4 = vrot.slane %v1200_v23, %v1222_v47 }
 0x15d   :  { %v408_v59 = vpop.permute.xlu1 %407  ;;  %v1165_v60 = vpop.permute.xlu0 %405 }
 0x15e   :  { %v413_v62 = vsel %vm411_vm5, %v1165_v60, %v408_v59 }
 0x161   :  { %v1188_v5 = vpop.permute.xlu1 %323  ;;  %v410_v6 = vpop.permute.xlu0 %409 }
 0x162   :  { %v412_v7 = vsel %vm411_vm5, %v408_v59, %v410_v6  ;;  %v415_v12 = vsel %vm411_vm5, %v410_v6, %v1158_v56  ;;  %v270_v6 = vrot.slane %v1245_v52, %v1125_v38 }
 0x163   :  { %v441_v15 = vmul.f32 %v430_v1, %v412_v7  ;;  %v442_v16 = vmul.f32 %v434_v2, %v415_v12  ;;  %v462_v1 = vrot.slane %v1133_v40, %v1219_v46  ;;  %v466_v2 = vrot.slane %v1133_v40, %v1222_v47 }
 0x164   :  { %v373_v40 = vsel %vm371_vm4, %v1154_v54, %v1152_v53  ;;  %v414_v12 = vsel %vm411_vm5, %v1158_v56, %v1165_v60 }
 0x165   :  { %v497_v17 = vpack.c.bf16 %v441_v15, %v401_v13  ;;  %v328_v18 = vpop.permute.xlu1 %327  ;;  %v1195_v19 = vpop.permute.xlu0 %325  ;;  %v498_v22 = vpack.c.bf16 %v442_v16, %v402_v14  ;;  %v440_v13 = vmul.f32 %v426_v51, %v413_v62  ;;  %v439_v51 = vmul.f32 %v422_v36, %v414_v12 }
 0x167   :  { %576 = vmatprep.subr.bf16.mxu1 %v498_v22 }
 0x168   :  { %577 = vmatpush1.bf16.msra.mxu1 %v497_v17 }
 0x169   :  { %v1207_v26 = vpop.permute.xlu1 %243  ;;  %v330_v27 = vpop.permute.xlu0 %329 }
 0x16a   :  { %v332_v30 = vsel %vm331_vm6, %v328_v18, %v330_v27  ;;  %v335_v31 = vsel %vm331_vm6, %v330_v27, %v1188_v5  ;;  %v374_v27 = vsel %vm371_vm4, %v1144_v45, %v1154_v54  ;;  %v334_v45 = vsel %vm331_vm6, %v1188_v5, %v1195_v19 }
 0x16b   :  { %v361_v32 = vmul.f32 %v350_v24, %v332_v30  ;;  %v362_v33 = vmul.f32 %v354_v25, %v335_v31  ;;  %v266_v30 = vrot.slane %v1245_v52, %v1222_v47  ;;  %v400_v31 = vmul.f32 %v386_v50, %v373_v40 }
 0x16c   :  { %v262_v54 = vrot.slane %v1245_v52, %v1219_v46 }
 0x16d   :  { %v493_v34 = vpack.c.bf16 %v361_v32, %v1063_v21  ;;  %v248_v35 = vpop.permute.xlu1 %247  ;;  %v1215_v43 = vpop.permute.xlu0 %245  ;;  %v494_v44 = vpack.c.bf16 %v362_v33, %v1069_v28  ;;  %v1231_v21 = vld [vmem:[%s1389_s1 + $0x3] ss:$8 sm:$0xf]  ;;  %v382_v28 = vrot.slane %v1163_v58, %v1219_v46  ;;  %v274_v58 = vrot.slane %v1245_v52, %v1128_v39  ;;  %v891_v52 = vld [vmem:[%s1389_s1 + $0x1] ss:$8 sm:$0xf] }
 0x16e   :  { %v310_v63 = vrot.slane %v1231_v21, %v1125_v38  ;;  %v314_v59 = vrot.slane %v1231_v21, %v1128_v39  ;;  %v253_v14 = vsel %vm251_vm8, %v1215_v43, %v248_v35  ;;  %v306_v62 = vrot.slane %v1231_v21, %v1222_v47 }
 0x16f   :  { %578 = vmatprep.subr.bf16.mxu1 %v494_v44  ;;  %v226_v40 = vrot.slane %v891_v52, %v1222_v47 }
 0x170   :  { %579 = vmatpush1.bf16.msra.mxu1 %v493_v34 }
 0x171   :  { %v1224_v48 = vpop.permute.xlu1 %283  ;;  %v1226_v49 = vpop.permute.xlu0 %249 }
 0x172   :  { %v252_v7 = vsel %vm251_vm8, %v248_v35, %v1226_v49  ;;  %v255_v12 = vsel %vm251_vm8, %v1226_v49, %v1207_v26 }
 0x173   :  { %v282_v56 = vmul.f32 %v274_v58, %v252_v7  ;;  %v496_v58 = vpack.c.bf16 %v440_v13, %v400_v31  ;;  %v230_v13 = vrot.slane %v891_v52, %v1125_v38 }
 0x175   :  { %v288_v55 = vpop.permute.xlu1 %287  ;;  %v286_v57 = vpop.permute.xlu0 %285 }
 0x176   :  { %v293_v61 = vsel %vm291_vm7, %v286_v57, %v288_v55  ;;  %v294_v5 = vsel %vm291_vm7, %v1224_v48, %v286_v57 }
 0x177   :  { %v321_v17 = vmul.f32 %v310_v63, %v293_v61  ;;  %v399_v63 = vmul.f32 %v382_v28, %v374_v27  ;;  %v359_v61 = vmul.f32 %v342_v3, %v334_v45 }
 0x179   :  { %v446_v15 = vpop.permute.xlu1 %445  ;;  %v290_v16 = vpop.permute.xlu0 %289  ;;  %v495_v57 = vpack.c.bf16 %v439_v51, %v399_v63 }
 0x17a   :  { %v453_v22 = vsel %vm451_vm2, %v446_v15, %v1135_v41  ;;  %v454_v53 = vsel %vm451_vm2, %v1137_v42, %v446_v15  ;;  %v292_v23 = vsel %vm291_vm7, %v288_v55, %v290_v16  ;;  %v333_v41 = vsel %vm331_vm6, %v1195_v19, %v328_v18  ;;  %v177_v55 = vld [vmem:[%s1389_s1] ss:$8 sm:$0xf] }
 0x17b   :  { %v479_v60 = vmul.f32 %v462_v1, %v454_v53  ;;  %v480_v24 = vmul.f32 %v466_v2, %v453_v22  ;;  %v322_v25 = vmul.f32 %v314_v59, %v292_v23  ;;  %v281_v42 = vmul.f32 %v270_v6, %v253_v14 }
 0x17c   :  { %v360_v50 = vmul.f32 %v346_v4, %v333_v41  ;;  %v302_v19 = vrot.slane %v1231_v21, %v1219_v46  ;;  %v186_v1 = vrot.slane %v177_v55, %v1222_v47  ;;  %v190_v28 = vrot.slane %v177_v55, %v1125_v38 }
 0x17d   :  { %v499_v32 = vpack.c.bf16 %v479_v60, %v479_v60  ;;  %v500_v33 = vpack.c.bf16 %v480_v24, %v480_v24  ;;  %v163_v34 = vpop.permute.xlu1 %162  ;;  %v165_v35 = vpop.permute.xlu0 %164  ;;  %v490_v44 = vpack.c.bf16 %v322_v25, %v282_v56  ;;  %v489_v18 = vpack.c.bf16 %v321_v17, %v281_v42 }
 0x17e   :  { %v254_v21 = vsel %vm251_vm8, %v1207_v26, %v1215_v43  ;;  %v295_v4 = vsel %vm291_vm7, %v290_v16, %v1224_v48  ;;  %v182_v3 = vrot.slane %v177_v55, %v1219_v46  ;;  %v320_v6 = vmul.f32 %v306_v62, %v294_v5 }
 0x17f   :  { %898 = vmatprep.subr.msk.bf16.mxu0 %vm514_vm3, %v500_v33  ;;  %580 = vmatprep.subr.bf16.mxu1 %v490_v44  ;;  %v516_v36 = vsel %vm514_vm3, %v499_v32, 0  ;;  %v492_v7 = vpack.c.bf16 %v360_v50, %v1074_v29  ;;  %v194_v43 = vrot.slane %v177_v55, %v1128_v39  ;;  %v222_v48 = vrot.slane %v891_v52, %v1219_v46 }
 0x180   :  { %534 = vmatpush1.bf16.msra.mxu0 %v516_v36  ;;  %581 = vmatpush1.bf16.msra.mxu1 %v489_v18  ;;  %v491_v14 = vpack.c.bf16 %v359_v61, %v1061_v20  ;;  %v280_v15 = vmul.f32 %v266_v30, %v254_v21  ;;  %v319_v29 = vmul.f32 %v302_v19, %v295_v4 }
 0x181   :  { %v167_v2 = vpop.permute.xlu1 %166  ;;  %535 = vmatprep.subr.bf16.mxu0 %v496_v58  ;;  %v169_v59 = vpop.permute.xlu0 %168  ;;  %v234_v47 = vrot.slane %v891_v52, %v1128_v39  ;;  %v175_v22 = vsel %vm172_vm9, %v163_v34, %v165_v35  ;;  %v279_v20 = vmul.f32 %v262_v54, %v255_v12  ;;  %v503_v54 = vld [vmem:[%s1391_s3] sm:$0xf] }
 0x182   :  { %v174_v26 = vsel %vm172_vm9, %v165_v35, %v167_v2  ;;  %v176_v38 = vsel %vm172_vm9, %v169_v59, %v163_v34  ;;  %v173_v49 = vsel %vm172_vm9, %v167_v2, %v169_v59  ;;  %v488_v23 = vpack.c.bf16 %v320_v6, %v280_v15  ;;  %v929_v12 = vld [vmem:[%s1392_s4] sm:$0xff]  }
 0x183   :  { %v487_v39 = vpack.c.bf16 %v319_v29, %v279_v20  ;;  %v200_v56 = vmul.f32 %v186_v1, %v175_v22  ;;  %v201_v60 = vmul.f32 %v190_v28, %v174_v26  ;;  %v199_v24 = vmul.f32 %v182_v3, %v176_v38 }
 0x184   :  { %536 = vmatpush1.bf16.msra.mxu0 %v495_v57  ;;  %v202_v41 = vmul.f32 %v194_v43, %v173_v49  ;;  %v930_v43 = vld [vmem:[%s1394_s6] sm:$0xff]   ;;  %s985_s6 = smov [#allocation5]  }
 0x185   :  { %v204_v16 = vpop.permute.xlu1 %203  ;;  %537 = vmatprep.subr.bf16.mxu0 %v492_v7  ;;  %v206_v17 = vpop.permute.xlu0 %205  ;;  %s875_s19 = sshll.u32 %s985_s6, 4  ;;  %s876_s19 = int_to_ptr.vmem [resolvable:$true] %s875_s19 }
 0x186   :  { %v214_v46 = vsel %vm211_vm10, %v204_v16, %v206_v17  ;;  %s951_s20 = scalar_lea.vmem %s876_s19, 1024  ;;  %p956_p6 = scmp.lt.s32.totalorder %s876_s19, %s876_s19 }
 0x187   :  { %v240_v53 = vmul.f32 %v226_v40, %v214_v46  ;;  %p952_p5 = scmp.ne.s32.totalorder %s876_s19, %s951_s20  ;;  %p957_p7 = scmp.lt.s32.totalorder %s951_s20, %s951_s20 }
 0x188   :  { %538 = vmatpush1.bf16.msra.mxu0 %v491_v14 }
 0x189   :  { %v208_v25 = vpop.permute.xlu1 %207  ;;  %539 = vmatprep.subr.bf16.mxu0 %v488_v23  ;;  %v210_v27 = vpop.permute.xlu0 %209  ;;  %v484_v35 = vpack.c.bf16 %v240_v53, %v200_v56  ;;  %p958_p8 = por %p957_p7, %p956_p6 }
 0x18a   :  { %v213_v30 = vsel %vm211_vm10, %v206_v17, %v208_v25  ;;  %v212_v42 = vsel %vm211_vm10, %v208_v25, %v210_v27  ;;  %v215_v31 = vsel %vm211_vm10, %v210_v27, %v204_v16 }
 0x18b   :  { %v241_v32 = vmul.f32 %v230_v13, %v213_v30  ;;  %v239_v33 = vmul.f32 %v222_v48, %v215_v31  ;;  %v242_v34 = vmul.f32 %v234_v47, %v212_v42  ;;  %p959_p9 = pnand %p958_p8, %p952_p5 }
 0x18c   :  { %540 = vmatpush1.bf16.msra.mxu0 %v487_v39 }
 0x18d   :  { %v485_v44 = vpack.c.bf16 %v241_v32, %v201_v60  ;;  %v483_v51 = vpack.c.bf16 %v239_v33, %v199_v24  ;;  %541 = vmatprep.subr.bf16.mxu0 %v484_v35  ;;  %v486_v45 = vpack.c.bf16 %v242_v34, %v202_v41 }
 0x18f   :  { %582 = vmatprep.subr.bf16.mxu1 %v486_v45 }
 0x190   :  { %542 = vmatpush1.bf16.msra.mxu0 %v483_v51  ;;  %583 = vmatpush1.bf16.msra.mxu1 %v485_v44 }
 0x193   :  { %899 = vmatmul.mubr.msk.bf16.vlgmr.msra.gmra.mxu0 %vm510_vm11, %v503_v54  ;;  %901 = vmatmul.mubr.msk.bf16.vlgmr.msra.gmra.mxu1 %vm510_vm11, %v503_v54 }
 0x194   :  { %684 = vmatprep.mubr.bf16.mxu0 %v976_v0  ;;  %727 = vmatprep.mubr.bf16.mxu1 %v976_v0 }
 0x196   :  { %v508_v37 = vpop.permute.xlu1 %507  ;;  %v624_v13 = vpop.permute.xlu0 %623 }
 0x19a   :  { %v745_v16 = vpop.permute.xlu0 %744  ;;  %v629_v17 = vpop.permute.xlu1 %628 }
 0x19e   :  { %v750_v42 = vpop.permute.xlu1 %749 }
 0x253   :  { %v561_v18 = vpop.f32.mrf.mxu0  ;;  %v602_v55 = vpop.f32.mrf.mxu1 }
 0x254   :  { %v562_v50 = vadd.f32 %v561_v18, %v508_v37  ;;  %v603_v62 = vadd.f32 %v602_v55, %v508_v37 }
 0x255   :  { %v563_v36 = vpop.f32.mrf.mxu0  ;;  %v604_v58 = vpop.f32.mrf.mxu1 }
 0x256   :  { %v609_v63 = vmax.f32 %v562_v50, 0.0  ;;  %v611_v5 = vmax.f32 %v603_v62, 0.0  ;;  %v564_v19 = vadd.f32 %v563_v36, %v508_v37  ;;  %v605_v52 = vadd.f32 %v604_v58, %v508_v37 }
 0x257   :  { %v565_v61 = vpop.f32.mrf.mxu0  ;;  %v606_v1 = vpop.f32.mrf.mxu1 }
 0x258   :  { %v615_v28 = vpack.c.bf16 %v609_v63, %v609_v63  ;;  %v617_v2 = vpack.c.bf16 %v611_v5, %v611_v5  ;;  %v610_v59 = vmax.f32 %v564_v19, 0.0  ;;  %v612_v57 = vmax.f32 %v605_v52, 0.0 }
 0x259   :  { %v566_v21 = vpop.f32.mrf.mxu0  ;;  %v607_v4 = vpop.f32.mrf.mxu1 }
 0x25a   :  { %v616_v3 = vpack.c.bf16 %v610_v59, %v610_v59  ;;  %v618_v6 = vpack.c.bf16 %v612_v57, %v612_v57  ;;  %v641_v7 = vsel %vm514_vm3, %v615_v28, 0  ;;  %v647_v40 = vsel %vm514_vm3, %v617_v2, 0 }
 0x25c   :  { %903 = vmatprep.subr.msk.bf16.mxu0 %vm514_vm3, %v616_v3  ;;  %905 = vmatprep.subr.msk.bf16.mxu1 %vm514_vm3, %v618_v6 }
 0x25d   :  { %667 = vmatpush1.bf16.msra.mxu0 %v641_v7  ;;  %710 = vmatpush1.bf16.msra.mxu1 %v647_v40 }
 0x25e   :  { %908 = vmatprep.subr.msk.bf16.mxu0 %vm63_vm0, %v1038_v8  ;;  %910 = vmatprep.subr.msk.bf16.mxu1 %vm63_vm0, %v1040_v9 }
 0x260   :  { %904 = vmatmul.mubr.msk.bf16.vlgmr.msra.gmra.mxu0 %vm636_vm12, %v929_v12  ;;  %906 = vmatmul.mubr.msk.bf16.vlgmr.msra.gmra.mxu1 %vm636_vm12, %v929_v12 }
 0x261   :  { %775 = vmatpush1.bf16.msra.mxu0 %v1043_v10  ;;  %818 = vmatpush1.bf16.msra.mxu1 %v1046_v11 }
 0x262   :  { %792 = vmatprep.mubr.bf16.mxu0 %v976_v0  ;;  %835 = vmatprep.mubr.bf16.mxu1 %v976_v0 }
 0x268   :  { %909 = vmatmul.mubr.msk.bf16.vlgmr.msra.gmra.mxu0 %vm59_vm1, %v930_v43  ;;  %911 = vmatmul.mubr.msk.bf16.vlgmr.msra.gmra.mxu1 %vm59_vm1, %v930_v43 }
 0x320   :  { %v686_v8 = vpop.f32.mrf.mxu0  ;;  %v729_v9 = vpop.f32.mrf.mxu1 }
 0x321   :  { %v687_v22 = vadd.f32 %v686_v8, %v624_v13  ;;  %v730_v26 = vadd.f32 %v729_v9, %v624_v13 }
 0x322   :  { %v688_v48 = vpop.f32.mrf.mxu0  ;;  %v731_v14 = vpop.f32.mrf.mxu1 }
 0x323   :  { %v689_v20 = vadd.f32 %v688_v48, %v624_v13  ;;  %v732_v49 = vadd.f32 %v731_v14, %v624_v13 }
 0x324   :  { %v690_v10 = vpop.f32.mrf.mxu0  ;;  %v733_v15 = vpop.f32.mrf.mxu1 }
 0x325   :  { %v691_v25 = vadd.f32 %v690_v10, %v629_v17  ;;  %v734_v27 = vadd.f32 %v733_v15, %v629_v17 }
 0x326   :  { %v692_v11 = vpop.f32.mrf.mxu0  ;;  %v735_v29 = vpop.f32.mrf.mxu1 }
 0x327   :  { %v693_v35 = vadd.f32 %v692_v11, %v629_v17  ;;  %v736_v44 = vadd.f32 %v735_v29, %v629_v17 }
 0x328   :  { %v794_v0 = vpop.f32.mrf.mxu0  ;;  %v837_v47 = vpop.f32.mrf.mxu1 }
 0x329   :  { %v795_v38 = vadd.f32 %v794_v0, %v745_v16  ;;  %v838_v46 = vadd.f32 %v837_v47, %v745_v16 }
 0x32a   :  { %v796_v53 = vpop.f32.mrf.mxu0  ;;  %v839_v23 = vpop.f32.mrf.mxu1 }
 0x32b   :  { %v846_v39 = vadd.f32 %v795_v38, %v687_v22  ;;  %v848_v56 = vadd.f32 %v838_v46, %v730_v26  ;;  %v797_v60 = vadd.f32 %v796_v53, %v745_v16  ;;  %v840_v24 = vadd.f32 %v839_v23, %v745_v16 }
 0x32c   :  { %v798_v41 = vpop.f32.mrf.mxu0  ;;  %v841_v30 = vpop.f32.mrf.mxu1 }
 0x32d   :  { %v854_v31 = vmax.f32 %v846_v39, 0.0  ;;  %v856_v32 = vmax.f32 %v848_v56, 0.0  ;;  %v847_v33 = vadd.f32 %v797_v60, %v689_v20  ;;  %v849_v34 = vadd.f32 %v840_v24, %v732_v49 }
 0x32e   :  { %v799_v51 = vadd.f32 %v798_v41, %v750_v42  ;;  %v842_v45 = vadd.f32 %v841_v30, %v750_v42  ;;  %v800_v54 = vpop.f32.mrf.mxu0  ;;  %v843_v37 = vpop.f32.mrf.mxu1 }
 0x32f   :  { %862 = vst [vmem:[#allocation5] sm:$0xff] %v854_v31  ;;  %864 = vst [vmem:[#allocation5 + $0x10] sm:$0xff] %v856_v32  ;;  %v855_v18 = vmax.f32 %v847_v33, 0.0  ;;  %v857_v55 = vmax.f32 %v849_v34, 0.0  ;;  %v801_v50 = vadd.f32 %v800_v54, %v750_v42  ;;  %v844_v62 = vadd.f32 %v843_v37, %v750_v42 }
 0x330   :  { %v850_v36 = vadd.f32 %v799_v51, %v691_v25  ;;  %v852_v58 = vadd.f32 %v842_v45, %v734_v27 }
 0x331   :  { %863 = vst [vmem:[#allocation5 + $0x8] sm:$0xff] %v855_v18  ;;  %865 = vst [vmem:[#allocation5 + $0x18] sm:$0xff] %v857_v55  ;;  %v851_v63 = vadd.f32 %v801_v50, %v693_v35  ;;  %v853_v5 = vadd.f32 %v844_v62, %v736_v44 }
 0x332   :  { %v858_v19 = vmax.f32 %v850_v36, 0.0  ;;  %v860_v52 = vmax.f32 %v852_v58, 0.0 }
 0x333   :  { %v859_v61 = vmax.f32 %v851_v63, 0.0  ;;  %v861_v1 = vmax.f32 %v853_v5, 0.0 }
 0x334   :  { %866 = vst [vmem:[#allocation5 + $0x20] sm:$0xff] %v858_v19  ;;  %868 = vst [vmem:[#allocation5 + $0x30] sm:$0xff] %v860_v52 }
 0x335   :  { %867 = vst [vmem:[#allocation5 + $0x28] sm:$0xff] %v859_v61  ;;  %869 = vst [vmem:[#allocation5 + $0x38] sm:$0xff] %v861_v1 }
 0x336   :  { %962 = shalt.err (!%p959_p9)
}
 0x337   :  { %s986_s21 = smov 512   ;;  %s987_s22 = smov 32  }
 0x338   :  { %881 = dma.vmem_to_hbm [thread:$0]  %s876_s19, 1024, %s1395_s7, [#allocation4], %s986_s21, %s986_s21, %s987_s22  }
 0x339   :  { %973 = dma.done.wait [#allocation4], 1024  }
 0x33a   :  { %974 = vsyncadd [#allocation4], 4294966272 }
 0x33b   :  { %885 = vsyncpa [#allocation3], 1 }
 0x33c   :  { %886 = vsyncpa [#allocation4], 1 }

</bundles_post_ra>
